<compile_context>
chip_gen: v5e
topology: v5e:2x2
jax: 0.10.0
libtpu: 0.0.40
codegen_flags: <defaults>
</compile_context>

<pallas_src>
import functools

import jax
import jax.numpy as jnp
from jax.experimental import pallas as pl
from jax.experimental.pallas import tpu as pltpu

_LANE = 128      # TPU lane width (last dim)
_SUBLANE = 8     # TPU sublane width (second-to-last dim)
# Default batch tile.  At bm=1024 the double-buffered x/out tiles are only a
# couple of MiB for typical input dims, well inside every generation's scoped
# VMEM default; lower block_m (or raise vmem_limit_bytes) for huge input_dim.
_DEFAULT_BLOCK_M = 1024


def _round_up(x, m):
    return ((x + m - 1) // m) * m


def _mlp_kernel(x_ref, w1_ref, b1_ref, w2_ref, b2_ref, out_ref,
                *, apply_softmax, output_dim):
    """One batch tile: fc1 -> ReLU -> fc2 -> (optional masked softmax).

    x_ref:  (TM, D_in)      f32 (cast to bf16 in-kernel for the MXU)
    w1_ref: (D_in, H_pad)   bf16   VMEM-resident across grid steps
    b1_ref: (1, H_pad)      f32    resident
    w2_ref: (H_pad, O_pad)  bf16   resident
    b2_ref: (1, O_pad)      f32    resident
    out_ref:(TM, O_pad)     bf16/f32, lane-dense store
    """
    # In-kernel bf16 cast (free VPU work; avoids a wrapper-side HBM pre-pass).
    x = x_ref[...].astype(jnp.bfloat16)

    # fc1: bf16 MXU matmul with f32 accumulation; bias + ReLU in f32.
    h = jnp.dot(x, w1_ref[...], preferred_element_type=jnp.float32)
    h = jnp.maximum(h + b1_ref[...], 0.0)                 # (TM, H_pad) f32

    # fc2: activations back to bf16 for the MXU, keep f32 accumulation.
    logits = jnp.dot(h.astype(jnp.bfloat16), w2_ref[...],
                     preferred_element_type=jnp.float32)
    logits = logits + b2_ref[...]                         # (TM, O_pad) f32

    if apply_softmax:
        # Padded output lanes (>= output_dim) must not enter max/sum: mask
        # them with -inf (exp(-inf) == 0).
        lane = jax.lax.broadcasted_iota(jnp.int32, logits.shape, dimension=1)
        masked = jnp.where(lane < output_dim, logits, -jnp.inf)
        m = jnp.max(masked, axis=-1, keepdims=True)
        e = jnp.exp(masked - m)
        denom = jnp.sum(e, axis=-1, keepdims=True)
        # EUP vrcp (otherwise-idle slot); rows sum to 1 within ~1e-3.
        logits = e * pl.reciprocal(denom, approx=True)

    out_ref[...] = logits.astype(out_ref.dtype)


def prepare_surname_classifier_params(w1, b1, w2, b2):
    """One-time pad/cast of the weights (call at init, reuse every forward).

    w1: (input_dim, hidden_dim), b1: (hidden_dim,)   [fc1, stored transposed]
    w2: (hidden_dim, output_dim), b2: (output_dim,)  [fc2, stored transposed]
    """
    input_dim, hidden_dim = w1.shape
    output_dim = w2.shape[1]
    h_pad = _round_up(hidden_dim, _LANE)
    o_pad = _round_up(output_dim, _LANE)

    w1_p = jnp.zeros((input_dim, h_pad), jnp.bfloat16).at[:, :hidden_dim].set(
        w1.astype(jnp.bfloat16))
    b1_p = jnp.zeros((1, h_pad), jnp.float32).at[:, :hidden_dim].set(
        b1.astype(jnp.float32)[None, :])
    w2_p = jnp.zeros((h_pad, o_pad), jnp.bfloat16).at[:hidden_dim, :output_dim].set(
        w2.astype(jnp.bfloat16))
    b2_p = jnp.zeros((1, o_pad), jnp.float32).at[:, :output_dim].set(
        b2.astype(jnp.float32)[None, :])

    return dict(w1=w1_p, b1=b1_p, w2=w2_p, b2=b2_p,
                input_dim=input_dim, hidden_dim=hidden_dim,
                output_dim=output_dim, h_pad=h_pad, o_pad=o_pad)


def surname_classifier_forward(x, params, apply_softmax=False,
                               block_m=_DEFAULT_BLOCK_M,
                               out_dtype=jnp.bfloat16):
    """Pallas forward pass matching SurnameClassifier.forward.

    Args:
      x:      (batch, input_dim) float32 (unpadded, uncast — handled in-kernel).
      params: output of prepare_surname_classifier_params (padded bf16 weights).
      apply_softmax: softmax over output_dim.
      out_dtype: kernel output dtype (bf16 default halves the dominant HBM
        write stream; pass jnp.float32 for bit-tighter numerics).
    Returns:
      (batch, output_dim) array of out_dtype.
    """
    batch, input_dim = x.shape
    assert input_dim == params["input_dim"]
    h_pad, o_pad = params["h_pad"], params["o_pad"]
    output_dim = params["output_dim"]

    # Batch tile: as large as possible (per-grid-step overhead ~0.35 us), but
    # split so batches spanning more than one sublane row land on >= 2 grid
    # steps — keeps both v7x TensorCores busy via the "parallel" axis.
    bm = min(_round_up(block_m, _SUBLANE),
             _round_up(pl.cdiv(batch, 2), _SUBLANE))
    bm = max(bm, _SUBLANE)
    n_tiles = pl.cdiv(batch, bm)

    kernel = functools.partial(_mlp_kernel,
                               apply_softmax=apply_softmax,
                               output_dim=output_dim)

    out_itemsize = jnp.dtype(out_dtype).itemsize
    cost = pl.CostEstimate(
        flops=2 * n_tiles * bm * (input_dim * h_pad + h_pad * o_pad),
        transcendentals=batch * o_pad if apply_softmax else 0,
        bytes_accessed=(x.size * x.dtype.itemsize
                        + params["w1"].size * 2 + params["w2"].size * 2
                        + params["b1"].size * 4 + params["b2"].size * 4
                        + batch * o_pad * out_itemsize),
    )

    out = pl.pallas_call(
        kernel,
        out_shape=jax.ShapeDtypeStruct((batch, o_pad), out_dtype),
        grid=(n_tiles,),
        in_specs=[
            # x: tiled over batch; ragged last tile reads garbage rows that
            # only ever reach write-masked / sliced-off output rows.
            pl.BlockSpec((bm, input_dim), lambda i: (i, 0)),
            # Weights/biases: constant index_map -> DMA'd once, VMEM-resident.
            pl.BlockSpec((input_dim, h_pad), lambda i: (0, 0)),
            pl.BlockSpec((1, h_pad), lambda i: (0, 0)),
            pl.BlockSpec((h_pad, o_pad), lambda i: (0, 0)),
            pl.BlockSpec((1, o_pad), lambda i: (0, 0)),
        ],
        out_specs=pl.BlockSpec((bm, o_pad), lambda i: (i, 0)),   # lane-dense
        compiler_params=pltpu.CompilerParams(
            dimension_semantics=("parallel",)),                   # megacore/v7x
        cost_estimate=cost,
    )(x, params["w1"], params["b1"], params["w2"], params["b2"])

    # TODO(synk): consumers that tolerate the padded (batch, o_pad) layout
    # should take `out` directly and skip this slice (extra HBM pass).
    return out[:, :output_dim]


# ----------------------------- references ---------------------------------
def _reference_f32(x, w1, b1, w2, b2, apply_softmax=False):
    h = jax.nn.relu(x @ w1 + b1)
    logits = h @ w2 + b2
    if apply_softmax:
        logits = jax.nn.softmax(logits, axis=1)
    return logits


def _reference_bf16(x, w1, b1, w2, b2, apply_softmax=False):
    # Mirrors the kernel's bf16-input / f32-accumulate matmuls exactly.
    xb, w1b, w2b = (t.astype(jnp.bfloat16) for t in (x, w1, w2))
    h = jnp.dot(xb, w1b, preferred_element_type=jnp.float32) + b1
    h = jnp.maximum(h, 0.0)
    logits = jnp.dot(h.astype(jnp.bfloat16), w2b,
                     preferred_element_type=jnp.float32) + b2
    if apply_softmax:
        logits = jax.nn.softmax(logits, axis=1)
    return logits


if __name__ == "__main__":
    input_dim, hidden_dim, output_dim = 32, 64, 18

    key = jax.random.PRNGKey(0)
    kx, kw1, kb1, kw2, kb2, kx2 = jax.random.split(key, 6)

    w1 = jax.random.normal(kw1, (input_dim, hidden_dim), dtype=jnp.float32) * 0.1
    b1 = jax.random.normal(kb1, (hidden_dim,), dtype=jnp.float32) * 0.1
    w2 = jax.random.normal(kw2, (hidden_dim, output_dim), dtype=jnp.float32) * 0.1
    b2 = jax.random.normal(kb2, (output_dim,), dtype=jnp.float32) * 0.1

    # Pad/cast the weights once ("model init"); reuse across forward calls.
    params = prepare_surname_classifier_params(w1, b1, w2, b2)

    # --- small batch (single, partial tile) ---
    batch = 2
    x = jax.random.normal(kx, (batch, input_dim), dtype=jnp.float32)

    logits = surname_classifier_forward(x, params, apply_softmax=False)       # bf16 out
    probs = surname_classifier_forward(x, params, apply_softmax=True)         # bf16 out
    logits_f32 = surname_classifier_forward(x, params, apply_softmax=False,
                                            out_dtype=jnp.float32)
    jax.block_until_ready((logits, probs, logits_f32))

    assert logits.shape == (batch, output_dim) and logits.dtype == jnp.bfloat16
    assert probs.shape == (batch, output_dim)
    assert logits_f32.shape == (batch, output_dim) and logits_f32.dtype == jnp.float32

    ref_logits_bf16 = _reference_bf16(x, w1, b1, w2, b2, False)
    ref_probs_bf16 = _reference_bf16(x, w1, b1, w2, b2, True)
    # f32-output path matches the bf16-matmul reference tightly.
    assert jnp.allclose(logits_f32, ref_logits_bf16, atol=1e-4, rtol=1e-4)
    # bf16-output path: only extra output quantization error.
    assert jnp.allclose(logits.astype(jnp.float32), ref_logits_bf16,
                        atol=1e-2, rtol=1e-2)
    assert jnp.allclose(probs.astype(jnp.float32), ref_probs_bf16,
                        atol=2e-2, rtol=2e-2)

    # Looser end-to-end check against the pure-f32 reference (bf16 rounding).
    ref_logits_f32 = _reference_f32(x, w1, b1, w2, b2, False)
    ref_probs_f32 = _reference_f32(x, w1, b1, w2, b2, True)
    assert jnp.allclose(logits.astype(jnp.float32), ref_logits_f32,
                        atol=5e-2, rtol=5e-2)
    assert jnp.allclose(probs.astype(jnp.float32), ref_probs_f32,
                        atol=5e-2, rtol=5e-2)
    # Softmax rows sum to ~1 despite lane padding + approx recip + bf16 out.
    assert jnp.allclose(jnp.sum(probs.astype(jnp.float32), axis=1), 1.0,
                        atol=3e-2)

    # --- ragged multi-tile batch (2 "parallel" grid steps + partial tail) ---
    batch2 = 37
    x2 = jax.random.normal(kx2, (batch2, input_dim), dtype=jnp.float32)
    probs2 = surname_classifier_forward(x2, params, apply_softmax=True)
    jax.block_until_ready(probs2)
    assert probs2.shape == (batch2, output_dim)
    ref_probs2 = _reference_bf16(x2, w1, b1, w2, b2, True)
    assert jnp.allclose(probs2.astype(jnp.float32), ref_probs2,
                        atol=2e-2, rtol=2e-2)
    assert jnp.allclose(jnp.sum(probs2.astype(jnp.float32), axis=1), 1.0,
                        atol=3e-2)

    print("KERNEL_OK")
</pallas_src>

<mosaic_0001>
module attributes {stable_mosaic.version = 11 : i64} {
  func.func @_mlp_kernel(%arg0: i32, %arg1: memref<8x32xf32, #tpu.memory_space<vmem>>, %arg2: memref<32x128xbf16, #tpu.memory_space<vmem>>, %arg3: memref<1x128xf32, #tpu.memory_space<vmem>>, %arg4: memref<128x128xbf16, #tpu.memory_space<vmem>>, %arg5: memref<1x128xf32, #tpu.memory_space<vmem>>, %arg6: memref<8x128xbf16, #tpu.memory_space<vmem>>) attributes {dimension_semantics = [#tpu.dimension_semantics<parallel>], iteration_bounds = array<i64: 1>, scalar_prefetch = 0 : i64, scratch_operands = 0 : i64, tpu.core_type = #tpu.core_type<tc>, window_params = [{transform_indices = @transform_0, window_bounds = array<i64: 8, 32>}, {pipeline_mode = #tpu.pipeline_mode<synchronous>, transform_indices = @transform_1, window_bounds = array<i64: 32, 128>}, {pipeline_mode = #tpu.pipeline_mode<synchronous>, transform_indices = @transform_2, window_bounds = array<i64: 1, 128>}, {pipeline_mode = #tpu.pipeline_mode<synchronous>, transform_indices = @transform_3, window_bounds = array<i64: 128, 128>}, {pipeline_mode = #tpu.pipeline_mode<synchronous>, transform_indices = @transform_4, window_bounds = array<i64: 1, 128>}, {transform_indices = @transform_5, window_bounds = array<i64: 8, 128>}]} {
    %c0 = arith.constant 0 : index
    %c0_0 = arith.constant 0 : index
    %0 = vector.load %arg1[%c0, %c0_0] : memref<8x32xf32, #tpu.memory_space<vmem>>, vector<8x32xf32>
    %1 = arith.truncf %0 : vector<8x32xf32> to vector<8x32xbf16>
    %c0_1 = arith.constant 0 : index
    %c0_2 = arith.constant 0 : index
    %2 = vector.load %arg2[%c0_1, %c0_2] : memref<32x128xbf16, #tpu.memory_space<vmem>>, vector<32x128xbf16>
    %cst = arith.constant dense<0.000000e+00> : vector<8x128xf32>
    %3 = tpu.matmul %1, %2, %cst {dimension_numbers = #tpu.dot_dimension_numbers<[1], [0], [0], [1], [0, 0, 1, 1], [], []>} : vector<8x32xbf16>, vector<32x128xbf16>, vector<8x128xf32> -> vector<8x128xf32>
    %c0_3 = arith.constant 0 : index
    %c0_4 = arith.constant 0 : index
    %4 = vector.load %arg3[%c0_3, %c0_4] : memref<1x128xf32, #tpu.memory_space<vmem>>, vector<1x128xf32>
    %5 = vector.broadcast %4 : vector<1x128xf32> to vector<8x128xf32>
    %6 = arith.addf %3, %5 : vector<8x128xf32>
    %cst_5 = arith.constant 0.000000e+00 : f32
    %7 = vector.broadcast %cst_5 : f32 to vector<8x128xf32>
    %8 = arith.maximumf %6, %7 : vector<8x128xf32>
    %9 = arith.truncf %8 : vector<8x128xf32> to vector<8x128xbf16>
    %c0_6 = arith.constant 0 : index
    %c0_7 = arith.constant 0 : index
    %10 = vector.load %arg4[%c0_6, %c0_7] : memref<128x128xbf16, #tpu.memory_space<vmem>>, vector<128x128xbf16>
    %cst_8 = arith.constant dense<0.000000e+00> : vector<8x128xf32>
    %11 = tpu.matmul %9, %10, %cst_8 {dimension_numbers = #tpu.dot_dimension_numbers<[1], [0], [0], [1], [0, 0, 1, 1], [], []>} : vector<8x128xbf16>, vector<128x128xbf16>, vector<8x128xf32> -> vector<8x128xf32>
    %c0_9 = arith.constant 0 : index
    %c0_10 = arith.constant 0 : index
    %12 = vector.load %arg5[%c0_9, %c0_10] : memref<1x128xf32, #tpu.memory_space<vmem>>, vector<1x128xf32>
    %13 = vector.broadcast %12 : vector<1x128xf32> to vector<8x128xf32>
    %14 = arith.addf %11, %13 : vector<8x128xf32>
    %15 = arith.truncf %14 : vector<8x128xf32> to vector<8x128xbf16>
    %c0_11 = arith.constant 0 : index
    %c0_12 = arith.constant 0 : index
    %16 = vector.load %arg6[%c0_11, %c0_12] : memref<8x128xbf16, #tpu.memory_space<vmem>>, vector<8x128xbf16>
    tpu.vector_store %arg6[%c0_11, %c0_12], %15 {strides = array<i32>} : memref<8x128xbf16, #tpu.memory_space<vmem>>, vector<8x128xbf16>,
    return
  }
  func.func @transform_0(%arg0: i32) -> (i32, i32) {
    %c0_i32 = arith.constant 0 : i32
    %c0_i32_0 = arith.constant 0 : i32
    return %arg0, %c0_i32 : i32, i32
  }
  func.func @transform_1(%arg0: i32) -> (i32, i32) {
    %c0_i32 = arith.constant 0 : i32
    %c0_i32_0 = arith.constant 0 : i32
    %c0_i32_1 = arith.constant 0 : i32
    return %c0_i32, %c0_i32_0 : i32, i32
  }
  func.func @transform_2(%arg0: i32) -> (i32, i32) {
    %c0_i32 = arith.constant 0 : i32
    %c0_i32_0 = arith.constant 0 : i32
    %c0_i32_1 = arith.constant 0 : i32
    return %c0_i32, %c0_i32_0 : i32, i32
  }
  func.func @transform_3(%arg0: i32) -> (i32, i32) {
    %c0_i32 = arith.constant 0 : i32
    %c0_i32_0 = arith.constant 0 : i32
    %c0_i32_1 = arith.constant 0 : i32
    return %c0_i32, %c0_i32_0 : i32, i32
  }
  func.func @transform_4(%arg0: i32) -> (i32, i32) {
    %c0_i32 = arith.constant 0 : i32
    %c0_i32_0 = arith.constant 0 : i32
    %c0_i32_1 = arith.constant 0 : i32
    return %c0_i32, %c0_i32_0 : i32, i32
  }
  func.func @transform_5(%arg0: i32) -> (i32, i32) {
    %c0_i32 = arith.constant 0 : i32
    %c0_i32_0 = arith.constant 0 : i32
    return %arg0, %c0_i32 : i32, i32
  }
}

</mosaic_0001>

<bundles_post_ra>
// kernel: tpu_custom_call.1
= control target key start
LH: loop header
LB: loop body
LE: loop exit
PB: predicated region body
PF: predicated region fallthrough
CT: control target
= control target key end

     0   :  { %10 = vsyncpa [#allocation3], 0  ;;  %s461_s0 = inlined_call_operand.hbm [shape: f32[2,32], index: 0, kind: input, shape index: {}]   ;;  %s462_s1 = inlined_call_operand.hbm [shape: bf16[32,128], index: 1, kind: input, shape index: {}]   ;;  %s463_s2 = inlined_call_operand.vmem [shape: f32[1,128], index: 2, kind: input, shape index: {}]   ;;  %s464_s3 = inlined_call_operand.hbm [shape: bf16[128,128], index: 3, kind: input, shape index: {}]   ;;  %s465_s4 = inlined_call_operand.vmem [shape: f32[1,128], index: 4, kind: input, shape index: {}]   ;;  %s466_s5 = inlined_call_operand.hbm [shape: bf16[2,128], index: 5, kind: output, shape index: {}]  }
   0x1   :  { %11 = vsyncpa [#allocation6], 0 }
   0x2   :  { %12 = vsyncpa [#allocation4], 0  ;;  %s30_s20 = sshll.u32 %s462_s1, 4  ;;  %s31_s20 = int_to_ptr.hbm [resolvable:$true] %s30_s20 }
   0x3   :  { %16 = vsyncadd [#allocation3], 96  ;;  %s403_s21 = smov [#allocation5]   ;;  %s17_s25 = sshll.u32 %s461_s0, 4  ;;  %s18_s25 = int_to_ptr.hbm [resolvable:$true] %s17_s25 }
   0x4   :  { %s32_s22 = sshll.u32 %s403_s21, 4  ;;  %s404_s26 = smov 64   ;;  %s33_s22 = int_to_ptr.vmem [resolvable:$true] %s32_s22 }
   0x5   :  { %s405_s27 = smov 4   ;;  %s406_s28 = smov [#allocation2]  }
   0x6   :  { %38 = dma.hbm_to_vmem [thread:$0]  %s31_s20, 256, %s33_s22, [#allocation6], %s404_s26, %s404_s26, %s405_s27  }
   0x7   :  { %s19_s29 = sshll.u32 %s406_s28, 4  ;;  %s407_s30 = smov 32   ;;  %s20_s29 = int_to_ptr.vmem [resolvable:$true] %s19_s29 }
   0x8   :  { %s408_s6 = smov 2   ;;  %s45_s8 = sshll.u32 %s464_s3, 4  ;;  %s46_s8 = int_to_ptr.hbm [resolvable:$true] %s45_s8 }
   0x9   :  { %25 = dma.hbm_to_vmem [thread:$0]  %s18_s25, 32, %s20_s29, [#allocation3], %s407_s30, %s407_s30, %s408_s6  }
   0xa   :  { %s409_s9 = smov [#allocation7]  }
   0xb   :  { %s47_s10 = sshll.u32 %s409_s9, 4  ;;  %s48_s10 = int_to_ptr.vmem [resolvable:$true] %s47_s10 }
   0xc   :  { %53 = dma.hbm_to_vmem [thread:$0]  %s46_s8, 1024, %s48_s10, [#allocation6], %s404_s26, %s404_s26, %s405_s27  }
   0xd   :  { %397 = dma.done.wait [#allocation3], 128  }
   0xe   :  { %398 = vsyncadd [#allocation3], 4294967168 }
   0xf   :  { %399 = dma.done.wait [#allocation6], 1280  }
  0x10   :  { %400 = vsyncadd [#allocation6], 4294966016  ;;  %v280_v0 = vld [vmem:[#allocation5 + $0x8] sm:$0xff]  ;;  %v279_v2 = vld [vmem:[#allocation5] sm:$0xff]  ;;  %vm91_vm0 = vcmask 261120   ;;  %vm194_vm1 = vcmask 1040384  }
  0x11   :  { %v288_v1 = vld [vmem:[#allocation7 + $0x38] sm:$0xff]  ;;  %101 = vmatpush.bf16.msra.mxu0 %v280_v0  ;;  %v69_v3 = vld [vmem:[#allocation2] sm:$0xff]  ;;  %v287_v4 = vld [vmem:[#allocation7 + $0x30] sm:$0xff]  ;;  %vm198_vm2 = vcmask 1041409   ;;  %vm202_vm3 = vcmask 1042434   ;;  %vm206_vm4 = vcmask 1043459  }
  0x12   :  { %178 = vmatpush.bf16.msra.mxu1 %v288_v1  ;;  %v70_v5 = vpack.c.bf16 %v69_v3, %v69_v3  ;;  %v286_v6 = vld [vmem:[#allocation7 + $0x28] sm:$0xff]  ;;  %v285_v7 = vld [vmem:[#allocation7 + $0x20] sm:$0xff]  ;;  %v284_v8 = vld [vmem:[#allocation7 + $0x18] sm:$0xff] }
  0x13   :  { %v283_v9 = vld [vmem:[#allocation7 + $0x10] sm:$0xff]  ;;  %v282_v10 = vld [vmem:[#allocation7 + $0x8] sm:$0xff]  ;;  %v281_v11 = vld [vmem:[#allocation7] sm:$0xff] }
  0x14   :  { %v299_v12 = vld [vmem:[%s463_s2] ss:$0 sm:$0xff] }
  0x15   :  { %102 = vmatpush.bf16.msra.mxu0 %v279_v2  ;;  %v300_v18 = vld [vmem:[%s465_s4] ss:$0 sm:$0xff] }
  0x16   :  { %179 = vmatpush.bf16.msra.mxu1 %v287_v4 }
  0x18   :  { %246 = vmatmul.msk.bf16.vlgmr.msra.gmra.mxu0 %vm91_vm0, %v70_v5 }
  0x1a   :  { %180 = vmatpush.bf16.msra.mxu1 %v286_v6 }
  0x1e   :  { %181 = vmatpush.bf16.msra.mxu1 %v285_v7 }
  0x22   :  { %182 = vmatpush.bf16.msra.mxu1 %v284_v8 }
  0x26   :  { %183 = vmatpush.bf16.msra.mxu1 %v283_v9 }
  0x2a   :  { %184 = vmatpush.bf16.msra.mxu1 %v282_v10 }
  0x2e   :  { %185 = vmatpush.bf16.msra.mxu1 %v281_v11 }
  0x95   :  { %v104_v13 = vpop.f32.mrf.mxu0 }
  0x96   :  { %v105_v14 = vadd.f32 %v299_v12, %v104_v13 }
  0x98   :  { %v108_v15 = vmax.f32 %v105_v14, 0.0 }
  0x9a   :  { %v109_v16 = vpack.c.bf16 %v108_v15, %v108_v15 }
  0x9c   :  { %186 = vmatmul.bf16.vlgmr.msra.gmra.mxu1 %v109_v16 }
  0x9d   :  { %v106_v17 = vpop.f32.mrf.mxu0 }
 0x119   :  { %v187_v19 = vpop.f32.mrf.mxu1 }
 0x11a   :  { %v188_v20 = vadd.f32 %v300_v18, %v187_v19 }
 0x11c   :  { %v191_v21 = vpack.c.bf16 %v188_v20, %v188_v20 }
 0x11e   :  { %v193_v22 = vrot.slane %v191_v21, 3 }
 0x120   :  { %v197_v23 = vsel %vm194_vm1, %v191_v21, %v193_v22  ;;  %v199_v24 = vsel %vm198_vm2, %v191_v21, %v193_v22  ;;  %v203_v25 = vsel %vm202_vm3, %v191_v21, %v193_v22  ;;  %v207_v26 = vsel %vm206_vm4, %v191_v21, %v193_v22 }
 0x121   :  { %v201_v27 = vrot.slane %v199_v24, 1  ;;  %v205_v28 = vrot.slane %v203_v25, 2  ;;  %v209_v29 = vrot.slane %v207_v26, 3  ;;  %214 = vst [vmem:[#allocation8] sm:$0x1] %v197_v23  ;;  %v189_v30 = vpop.f32.mrf.mxu1 }
 0x123   :  { %215 = vst [vmem:[#allocation8 + $0x1] sm:$0x1] %v201_v27 }
 0x124   :  { %216 = vst [vmem:[#allocation8 + $0x2] sm:$0x1] %v205_v28 }
 0x125   :  { %217 = vst [vmem:[#allocation8 + $0x3] sm:$0x1] %v209_v29 }
 0x126   :  { %221 = vsyncadd [#allocation4], 48  ;;  %s224_s13 = sshll.u32 %s466_s5, 4  ;;  %s410_s14 = smov [#allocation8]   ;;  %s225_s13 = int_to_ptr.hbm [resolvable:$true] %s224_s13 }
 0x127   :  { %s222_s15 = sshll.u32 %s410_s14, 4  ;;  %s411_s16 = smov 16   ;;  %s223_s15 = int_to_ptr.vmem [resolvable:$true] %s222_s15 }
 0x128   :  { %s412_s17 = smov 1  }
 0x129   :  { %230 = dma.vmem_to_hbm [thread:$0]  %s223_s15, 16, %s225_s13, [#allocation4], %s411_s16, %s411_s16, %s412_s17  }
 0x12a   :  { %401 = dma.done.wait [#allocation4], 64  }
 0x12b   :  { %402 = vsyncadd [#allocation4], 4294967232 }
 0x12c   :  { %235 = vsyncpa [#allocation3], 1 }
 0x12d   :  { %236 = vsyncpa [#allocation6], 1 }
 0x12e   :  { %237 = vsyncpa [#allocation4], 1 }

</bundles_post_ra>
